<compile_context>
chip_gen: v7x
topology: tpu7x:2x2x1
jax: 0.10.0
libtpu: 0.0.40
codegen_flags: <defaults>
</compile_context>

<pallas_src>
import functools

import jax
import jax.numpy as jnp
from jax.experimental import pallas as pl
from jax.experimental.pallas import tpu as pltpu


def _round_up(x, m):
    return ((x + m - 1) // m) * m


def _default_elementwise_dtype():
    """bf16 bias/ReLU only on bf16-VPU chips (v6e, v7x); f32 elsewhere."""
    try:
        kind = jax.devices()[0].device_kind.lower()
    except Exception:
        kind = ""
    return jnp.bfloat16 if ("v6" in kind or "v7" in kind) else jnp.float32


def _actor_kernel(scale, in_pad, n_feat, n_out_pad, offsets, ew,
                  x_ref, w_ref, out_ref):
    """Fused MLP: relu(relu(relu(x@W1+b1)@W2+b2)@W3+b3)@Wa+ba -> tanh -> *scale.

    `w_ref` holds all weights + biases packed row-wise (bf16):
      rows [o1, o1+in_pad)  : W1 (n_in rows real, rest zero)   width n_feat
      rows [o2, o2+n_feat)  : W2                               width n_feat
      rows [o3, o3+n_feat)  : W3                               width n_feat
      rows [o4, o4+n_feat)  : Wa (padded to n_out_pad cols)
      rows [ob, ob+4)       : b1 / b2 / b3 / ba
    All offsets are static Python ints and 8/16-row aligned.
    """
    o1, o2, o3, o4, ob = offsets
    w1 = w_ref[o1:o1 + in_pad, :n_feat]
    w2 = w_ref[o2:o2 + n_feat, :n_feat]
    w3 = w_ref[o3:o3 + n_feat, :n_feat]
    wa = w_ref[o4:o4 + n_feat, :n_out_pad]
    b = w_ref[ob:ob + 4, :]
    b1 = b[0:1, :n_feat].astype(ew)
    b2 = b[1:2, :n_feat].astype(ew)
    b3 = b[2:3, :n_feat].astype(ew)
    ba = b[3:4, :n_out_pad].astype(jnp.float32)

    x = x_ref[...]                                               # bf16 (bm, in_pad)

    # Dots accumulate in f32 on the MXU; elementwise chain in `ew`
    # (bf16 on v6e/v7x -> half the VALU/ld-st passes, f32 on v5e/v4).
    h = jnp.dot(x, w1, preferred_element_type=jnp.float32).astype(ew)
    h = jnp.maximum(h + b1, 0.0).astype(jnp.bfloat16)

    h = jnp.dot(h, w2, preferred_element_type=jnp.float32).astype(ew)
    h = jnp.maximum(h + b2, 0.0).astype(jnp.bfloat16)

    h = jnp.dot(h, w3, preferred_element_type=jnp.float32).astype(ew)
    h = jnp.maximum(h + b3, 0.0).astype(jnp.bfloat16)

    a = jnp.dot(h, wa, preferred_element_type=jnp.float32) + ba   # tiny: (bm, 128)
    out_ref[...] = (jnp.tanh(a) * scale).astype(out_ref.dtype)    # bf16 store


def prepare_actor_params(params):
    """One-time packing of (w1,b1,w2,b2,w3,b3,wa,ba) -> (bf16 buffer, meta).

    Call once per parameter update; `actor_forward` then does zero per-call
    parameter preprocessing.
    """
    w1, b1, w2, b2, w3, b3, wa, ba = params
    n_in, n_feat = w1.shape
    n_out = wa.shape[1]
    in_pad = _round_up(n_in, 128)          # lane-dense layer-1 K dim
    n_out_pad = _round_up(n_out, 128)      # lane-dense action head
    width = max(n_feat, n_out_pad)

    o1 = 0
    o2 = o1 + in_pad
    o3 = o2 + n_feat
    o4 = o3 + n_feat
    ob = o4 + n_feat
    rows = ob + 8                          # 4 bias rows, padded to 8

    pack = jnp.zeros((rows, width), jnp.float32)
    pack = pack.at[o1:o1 + n_in, :n_feat].set(w1.astype(jnp.float32))
    pack = pack.at[o2:o2 + n_feat, :n_feat].set(w2.astype(jnp.float32))
    pack = pack.at[o3:o3 + n_feat, :n_feat].set(w3.astype(jnp.float32))
    pack = pack.at[o4:o4 + n_feat, :n_out].set(wa.astype(jnp.float32))
    pack = pack.at[ob + 0, :n_feat].set(jnp.reshape(b1, (-1,)).astype(jnp.float32))
    pack = pack.at[ob + 1, :n_feat].set(jnp.reshape(b2, (-1,)).astype(jnp.float32))
    pack = pack.at[ob + 2, :n_feat].set(jnp.reshape(b3, (-1,)).astype(jnp.float32))
    pack = pack.at[ob + 3, :n_out].set(jnp.reshape(ba, (-1,)).astype(jnp.float32))
    pack = pack.astype(jnp.bfloat16)

    meta = dict(n_in=n_in, in_pad=in_pad, n_feat=n_feat,
                n_out=n_out, n_out_pad=n_out_pad,
                offsets=(o1, o2, o3, o4, ob))
    return pack, meta


def actor_forward(state, packed, meta, max_action, scaled=True,
                  block_batch=1024, elementwise_dtype=None):
    """state: (B, 1, n_input) or (B, n_input). Returns (B, n_output) float32."""
    if state.ndim == 3 and state.shape[1] == 1:
        state = jnp.squeeze(state, axis=1)                 # torch.squeeze(state, 1)
    B, n_in = state.shape
    assert n_in == meta["n_in"]
    in_pad = meta["in_pad"]
    n_feat = meta["n_feat"]
    n_out = meta["n_out"]
    n_out_pad = meta["n_out_pad"]

    if elementwise_dtype is None:
        elementwise_dtype = _default_elementwise_dtype()

    # Batch tiling:
    #  - small B   : single tile (rounded to 8 sublanes)
    #  - moderate B: split into >=2 tiles so both v7x TensorCores get work
    #  - large B   : block_batch-row tiles (big tiles amortize ~0.35us/step)
    B8 = _round_up(B, 8)
    if B8 > block_batch:
        bm = block_batch
    elif B8 >= 256:
        bm = _round_up(pl.cdiv(B8, 2), 16)
    else:
        bm = B8
    B_pad = _round_up(B8, bm)
    n_blocks = B_pad // bm

    # Single cast to bf16 (no redundant f32 round trip) + zero-pad rows/cols.
    x = state.astype(jnp.bfloat16)
    if B_pad != B or in_pad != n_in:
        x = jnp.pad(x, ((0, B_pad - B), (0, in_pad - n_in)))

    scale = float(max_action) if scaled else 1.0
    kernel = functools.partial(_actor_kernel, scale, in_pad, n_feat, n_out_pad,
                               meta["offsets"], elementwise_dtype)

    out = pl.pallas_call(
        kernel,
        out_shape=jax.ShapeDtypeStruct((B_pad, n_out_pad), jnp.bfloat16),
        grid=(n_blocks,),
        in_specs=[
            pl.BlockSpec((bm, in_pad), lambda i: (i, 0)),      # activation stream
            pl.BlockSpec(packed.shape, lambda i: (0, 0)),      # VMEM-resident params
        ],
        out_specs=pl.BlockSpec((bm, n_out_pad), lambda i: (i, 0)),
        compiler_params=pltpu.CompilerParams(
            dimension_semantics=("parallel",)),                # megacore sharding
    )(x, packed)

    return out[:B, :n_out].astype(jnp.float32)


def actor_reference(state, params, max_action, scaled=True):
    """Pure-JAX f32 reference (matches the PyTorch forward)."""
    if state.ndim == 3 and state.shape[1] == 1:
        state = jnp.squeeze(state, axis=1)
    x = state.astype(jnp.float32)
    w1, b1, w2, b2, w3, b3, wa, ba = params
    h = jax.nn.relu(x @ w1 + b1)
    h = jax.nn.relu(h @ w2 + b2)
    h = jax.nn.relu(h @ w3 + b3)
    out = jnp.tanh(h @ wa + ba)
    return out * max_action if scaled else out


def _xavier_uniform(key, fan_in, fan_out, gain):
    # torch.nn.init.xavier_uniform_ : U(-a, a), a = gain * sqrt(6/(fan_in+fan_out))
    a = gain * jnp.sqrt(6.0 / (fan_in + fan_out))
    # stored transposed (in, out) so the kernel computes x @ W
    return jax.random.uniform(key, (fan_in, fan_out), jnp.float32, -a, a)


def _linear_bias(key, fan_in, fan_out):
    # torch default Linear bias init: U(-1/sqrt(fan_in), 1/sqrt(fan_in))
    bound = 1.0 / jnp.sqrt(fan_in)
    return jax.random.uniform(key, (1, fan_out), jnp.float32, -bound, bound)


def init_actor_params(key, n_input, n_output, n_features=256):
    gain_relu = jnp.sqrt(2.0)         # calculate_gain('relu')
    gain_tanh = 5.0 / 3.0             # calculate_gain('tanh')
    ks = jax.random.split(key, 8)
    w1 = _xavier_uniform(ks[0], n_input, n_features, gain_relu)
    b1 = _linear_bias(ks[1], n_input, n_features)
    w2 = _xavier_uniform(ks[2], n_features, n_features, gain_relu)
    b2 = _linear_bias(ks[3], n_features, n_features)
    w3 = _xavier_uniform(ks[4], n_features, n_features, gain_relu)
    b3 = _linear_bias(ks[5], n_features, n_features)
    wa = _xavier_uniform(ks[6], n_features, n_output, gain_tanh)
    ba = _linear_bias(ks[7], n_features, n_output)
    return (w1, b1, w2, b2, w3, b3, wa, ba)


if __name__ == "__main__":
    key = jax.random.PRNGKey(0)
    k_param, k_state, k_state2 = jax.random.split(key, 3)

    batch = 8
    n_input = 16       # input_shape[-1]
    n_output = 4       # output_shape[0]
    max_action = 2.0

    params = init_actor_params(k_param, n_input, n_output)
    packed, meta = prepare_actor_params(params)     # one-time packing

    # state shaped like the PyTorch module expects: (B, 1, n_input)
    state = jax.random.normal(k_state, (batch, 1, n_input), dtype=jnp.float32)

    out = actor_forward(state, packed, meta, max_action, scaled=True)
    out = jax.block_until_ready(out)

    # sanity: correct shape, bounded by max_action, and close to the f32 reference
    # (bf16 weights/activations -> small expected deviation; f32 accumulation).
    assert out.shape == (batch, n_output)
    assert bool(jnp.all(jnp.abs(out) <= max_action + 1e-5))
    ref = actor_reference(state, params, max_action, scaled=True)
    assert bool(jnp.allclose(out, ref, atol=5e-2, rtol=5e-2)), (
        f"max abs diff {float(jnp.max(jnp.abs(out - ref)))}")

    # also exercise the moderate-batch path (>=2 grid blocks + row padding)
    state2 = jax.random.normal(k_state2, (300, 1, n_input), dtype=jnp.float32)
    out2 = jax.block_until_ready(
        actor_forward(state2, packed, meta, max_action, scaled=True))
    ref2 = actor_reference(state2, params, max_action, scaled=True)
    assert out2.shape == (300, n_output)
    assert bool(jnp.allclose(out2, ref2, atol=5e-2, rtol=5e-2)), (
        f"max abs diff {float(jnp.max(jnp.abs(out2 - ref2)))}")

    print("KERNEL_OK")
</pallas_src>

<mosaic_0001>
module attributes {stable_mosaic.version = 11 : i64} {
  func.func @_actor_kernel(%arg0: i32, %arg1: memref<8x128xbf16, #tpu.memory_space<vmem>>, %arg2: memref<904x256xbf16, #tpu.memory_space<vmem>>, %arg3: memref<8x128xbf16, #tpu.memory_space<vmem>>) attributes {dimension_semantics = [#tpu.dimension_semantics<parallel>], iteration_bounds = array<i64: 1>, scalar_prefetch = 0 : i64, scratch_operands = 0 : i64, tpu.core_type = #tpu.core_type<tc>, window_params = [{transform_indices = @transform_0, window_bounds = array<i64: 8, 128>}, {pipeline_mode = #tpu.pipeline_mode<synchronous>, transform_indices = @transform_1, window_bounds = array<i64: 904, 256>}, {transform_indices = @transform_2, window_bounds = array<i64: 8, 128>}]} {
    %c0 = arith.constant 0 : index
    %c0_0 = arith.constant 0 : index
    %0 = vector.load %arg2[%c0, %c0_0] : memref<904x256xbf16, #tpu.memory_space<vmem>>, vector<128x256xbf16>
    %c128 = arith.constant 128 : index
    %c0_1 = arith.constant 0 : index
    %1 = vector.load %arg2[%c128, %c0_1] : memref<904x256xbf16, #tpu.memory_space<vmem>>, vector<256x256xbf16>
    %c384 = arith.constant 384 : index
    %c0_2 = arith.constant 0 : index
    %2 = vector.load %arg2[%c384, %c0_2] : memref<904x256xbf16, #tpu.memory_space<vmem>>, vector<256x256xbf16>
    %c640 = arith.constant 640 : index
    %c0_3 = arith.constant 0 : index
    %3 = vector.load %arg2[%c640, %c0_3] : memref<904x256xbf16, #tpu.memory_space<vmem>>, vector<256x128xbf16>
    %c896 = arith.constant 896 : index
    %c0_4 = arith.constant 0 : index
    %4 = vector.load %arg2[%c896, %c0_4] : memref<904x256xbf16, #tpu.memory_space<vmem>>, vector<4x256xbf16>
    %5 = vector.extract_strided_slice %4 {offsets = [0, 0], sizes = [1, 256], strides = [1, 1]} : vector<4x256xbf16> to vector<1x256xbf16>
    %6 = arith.extf %5 : vector<1x256xbf16> to vector<1x256xf32>
    %7 = vector.extract_strided_slice %4 {offsets = [1, 0], sizes = [1, 256], strides = [1, 1]} : vector<4x256xbf16> to vector<1x256xbf16>
    %8 = arith.extf %7 : vector<1x256xbf16> to vector<1x256xf32>
    %9 = vector.extract_strided_slice %4 {offsets = [2, 0], sizes = [1, 256], strides = [1, 1]} : vector<4x256xbf16> to vector<1x256xbf16>
    %10 = arith.extf %9 : vector<1x256xbf16> to vector<1x256xf32>
    %11 = vector.extract_strided_slice %4 {offsets = [3, 0], sizes = [1, 128], strides = [1, 1]} : vector<4x256xbf16> to vector<1x128xbf16>
    %12 = arith.extf %11 : vector<1x128xbf16> to vector<1x128xf32>
    %c0_5 = arith.constant 0 : index
    %c0_6 = arith.constant 0 : index
    %13 = vector.load %arg1[%c0_5, %c0_6] : memref<8x128xbf16, #tpu.memory_space<vmem>>, vector<8x128xbf16>
    %cst = arith.constant dense<0.000000e+00> : vector<8x256xf32>
    %14 = tpu.matmul %13, %0, %cst {dimension_numbers = #tpu.dot_dimension_numbers<[1], [0], [0], [1], [0, 0, 1, 1], [], []>} : vector<8x128xbf16>, vector<128x256xbf16>, vector<8x256xf32> -> vector<8x256xf32>
    %15 = vector.broadcast %6 : vector<1x256xf32> to vector<8x256xf32>
    %16 = arith.addf %14, %15 : vector<8x256xf32>
    %cst_7 = arith.constant 0.000000e+00 : f32
    %17 = vector.broadcast %cst_7 : f32 to vector<8x256xf32>
    %18 = arith.maximumf %16, %17 : vector<8x256xf32>
    %19 = arith.truncf %18 : vector<8x256xf32> to vector<8x256xbf16>
    %cst_8 = arith.constant dense<0.000000e+00> : vector<8x256xf32>
    %20 = tpu.matmul %19, %1, %cst_8 {dimension_numbers = #tpu.dot_dimension_numbers<[1], [0], [0], [1], [0, 0, 1, 1], [], []>} : vector<8x256xbf16>, vector<256x256xbf16>, vector<8x256xf32> -> vector<8x256xf32>
    %21 = vector.broadcast %8 : vector<1x256xf32> to vector<8x256xf32>
    %22 = arith.addf %20, %21 : vector<8x256xf32>
    %cst_9 = arith.constant 0.000000e+00 : f32
    %23 = vector.broadcast %cst_9 : f32 to vector<8x256xf32>
    %24 = arith.maximumf %22, %23 : vector<8x256xf32>
    %25 = arith.truncf %24 : vector<8x256xf32> to vector<8x256xbf16>
    %cst_10 = arith.constant dense<0.000000e+00> : vector<8x256xf32>
    %26 = tpu.matmul %25, %2, %cst_10 {dimension_numbers = #tpu.dot_dimension_numbers<[1], [0], [0], [1], [0, 0, 1, 1], [], []>} : vector<8x256xbf16>, vector<256x256xbf16>, vector<8x256xf32> -> vector<8x256xf32>
    %27 = vector.broadcast %10 : vector<1x256xf32> to vector<8x256xf32>
    %28 = arith.addf %26, %27 : vector<8x256xf32>
    %cst_11 = arith.constant 0.000000e+00 : f32
    %29 = vector.broadcast %cst_11 : f32 to vector<8x256xf32>
    %30 = arith.maximumf %28, %29 : vector<8x256xf32>
    %31 = arith.truncf %30 : vector<8x256xf32> to vector<8x256xbf16>
    %cst_12 = arith.constant dense<0.000000e+00> : vector<8x128xf32>
    %32 = tpu.matmul %31, %3, %cst_12 {dimension_numbers = #tpu.dot_dimension_numbers<[1], [0], [0], [1], [0, 0, 1, 1], [], []>} : vector<8x256xbf16>, vector<256x128xbf16>, vector<8x128xf32> -> vector<8x128xf32>
    %33 = vector.broadcast %12 : vector<1x128xf32> to vector<8x128xf32>
    %34 = arith.addf %32, %33 : vector<8x128xf32>
    %35 = math.tanh %34 : vector<8x128xf32>
    %cst_13 = arith.constant 2.000000e+00 : f32
    %36 = vector.broadcast %cst_13 : f32 to vector<8x128xf32>
    %37 = arith.mulf %35, %36 : vector<8x128xf32>
    %38 = arith.truncf %37 : vector<8x128xf32> to vector<8x128xbf16>
    %c0_14 = arith.constant 0 : index
    %c0_15 = arith.constant 0 : index
    %39 = vector.load %arg3[%c0_14, %c0_15] : memref<8x128xbf16, #tpu.memory_space<vmem>>, vector<8x128xbf16>
    tpu.vector_store %arg3[%c0_14, %c0_15], %38 {strides = array<i32>} : memref<8x128xbf16, #tpu.memory_space<vmem>>, vector<8x128xbf16>,
    return
  }
  func.func @transform_0(%arg0: i32) -> (i32, i32) {
    %c0_i32 = arith.constant 0 : i32
    %c0_i32_0 = arith.constant 0 : i32
    return %arg0, %c0_i32 : i32, i32
  }
  func.func @transform_1(%arg0: i32) -> (i32, i32) {
    %c0_i32 = arith.constant 0 : i32
    %c0_i32_0 = arith.constant 0 : i32
    %c0_i32_1 = arith.constant 0 : i32
    return %c0_i32, %c0_i32_0 : i32, i32
  }
  func.func @transform_2(%arg0: i32) -> (i32, i32) {
    %c0_i32 = arith.constant 0 : i32
    %c0_i32_0 = arith.constant 0 : i32
    return %arg0, %c0_i32 : i32, i32
  }
}

</mosaic_0001>

<bundles_post_ra>
// kernel: tpu_custom_call.1
= control target key start
LH: loop header
LB: loop body
LE: loop exit
PB: predicated region body
PF: predicated region fallthrough
CT: control target
= control target key end

     0   :  { %7 = vsyncpa [#allocation3], 0  ;;  %s1289_s0 = inlined_call_operand.hbm [shape: bf16[8,128], index: 0, kind: input, shape index: {}]   ;;  %s1290_s1 = inlined_call_operand.hbm [shape: bf16[904,256], index: 1, kind: input, shape index: {}]   ;;  %s1291_s2 = inlined_call_operand.hbm [shape: bf16[8,128], index: 2, kind: output, shape index: {}]  }
   0x1   :  { %8 = vsyncpa [#allocation6], 0 }
   0x2   :  { %9 = vsyncpa [#allocation4], 0  ;;  %s1208_s9 = smov [#allocation2]   ;;  %s1209_s11 = smov [#allocation5]  }
   0x3   :  { %s16_s10 = sshll.u32 %s1208_s9, 4  ;;  %s25_s12 = sshll.u32 %s1209_s11, 4  ;;  %s17_s10 = int_to_ptr.vmem [resolvable:$true] %s16_s10  ;;  %s1229_s12 = int_to_ptr.vmem [resolvable:$true] %s25_s12 }
   0x4   :  { %s1136_s15 = scalar_lea.hbm %s1289_s0, 64 }
   0x5   :  { %p1137_p0 = scmp.ne.s32.totalorder %s1289_s0, %s1136_s15  ;;  %p1140_p1 = scmp.lt.u32.totalorder %s1136_s15, %s1289_s0 }
   0x7   :  { %p1142_p2 = pnand %p1140_p1, %p1137_p0 }
   0x9   :  { %1145 = shalt.err (!%p1142_p2)
}
   0xa   :  { %s1146_s20 = scalar_lea.vmem %s17_s10, 64  ;;  %p1151_p4 = scmp.lt.s32.totalorder %s17_s10, %s17_s10 }
   0xb   :  { %p1147_p3 = scmp.ne.s32.totalorder %s17_s10, %s1146_s20  ;;  %p1152_p5 = scmp.lt.s32.totalorder %s1146_s20, %s1146_s20 }
   0xd   :  { %p1153_p6 = por %p1152_p5, %p1151_p4 }
   0xf   :  { %p1154_p7 = pnand %p1153_p6, %p1147_p3 }
  0x11   :  { %1157 = shalt.err (!%p1154_p7)
}
  0x12   :  { %19 = dma.hbm_to_vmem [thread:$0]  %s1289_s0, 64, %s17_s10, [#allocation3]  }
  0x13   :  { %s1158_s25 = scalar_lea.hbm %s1290_s1, 14464 }
  0x14   :  { %p1159_p8 = scmp.ne.s32.totalorder %s1290_s1, %s1158_s25  ;;  %p1162_p9 = scmp.lt.u32.totalorder %s1158_s25, %s1290_s1 }
  0x16   :  { %p1164_p10 = pnand %p1162_p9, %p1159_p8 }
  0x18   :  { %1167 = shalt.err (!%p1164_p10)
}
  0x19   :  { %s1168_s30 = scalar_lea.vmem %s1229_s12, 14464  ;;  %p1173_p12 = scmp.lt.s32.totalorder %s1229_s12, %s1229_s12 }
  0x1a   :  { %p1169_p11 = scmp.ne.s32.totalorder %s1229_s12, %s1168_s30  ;;  %p1174_p13 = scmp.lt.s32.totalorder %s1168_s30, %s1168_s30 }
  0x1c   :  { %p1175_p0 = por %p1174_p13, %p1173_p12 }
  0x1e   :  { %p1176_p1 = pnand %p1175_p0, %p1169_p11 }
  0x20   :  { %1179 = shalt.err (!%p1176_p1)
}
  0x21   :  { %s1210_s0 = smov 128   ;;  %s1211_s3 = smov 8  }
  0x22   :  { %31 = dma.hbm_to_vmem [thread:$0]  %s1290_s1, 14464, %s1229_s12, [#allocation6], %s1210_s0, %s1210_s0, %s1211_s3  }
  0x23   :  { %1202 = dma.done.wait [#allocation3], 64  }
  0x24   :  { %1203 = vsyncadd [#allocation3], 4294967232 }
  0x25   :  { %1204 = dma.done.wait [#allocation6], 14464  }
  0x26   :  { %1205 = vsyncadd [#allocation6], 4294952832  ;;  %v1212_v0 = vmov 0   ;;  %v998_v1 = vld [vmem:[#allocation5 + $0x4] ss:$8 sps:$4 sm:$0xff]   ;;  %s1213_s1 = smov [#allocation7]  }
  0x27   :  { %275 = vmatprep.mubr.bf16.mxu0 %v1212_v0  ;;  %v1000_v2 = vld [vmem:[#allocation5] ss:$8 sps:$4 sm:$0xff]   ;;  %243 = vmatprep.subr.bf16.mxu0 %v998_v1  ;;  %v1001_v3 = vld [vmem:[#allocation5 + $0x14] ss:$8 sps:$4 sm:$0xff]   ;;  %v1003_v4 = vld [vmem:[#allocation5 + $0x10] ss:$8 sps:$4 sm:$0xff]  }
  0x28   :  { %244 = vmatpush1.bf16.msra.mxu0 %v1000_v2  ;;  %v1004_v5 = vld [vmem:[#allocation5 + $0x24] ss:$8 sps:$4 sm:$0xff]   ;;  %v1006_v6 = vld [vmem:[#allocation5 + $0x20] ss:$8 sps:$4 sm:$0xff]   ;;  %v1007_v7 = vld [vmem:[#allocation5 + $0x34] ss:$8 sps:$4 sm:$0xff]  }
  0x29   :  { %245 = vmatprep.subr.bf16.mxu0 %v1001_v3  ;;  %v1009_v8 = vld [vmem:[#allocation5 + $0x30] ss:$8 sps:$4 sm:$0xff]   ;;  %v1010_v9 = vld [vmem:[#allocation5 + $0x44] ss:$8 sps:$4 sm:$0xff]   ;;  %v1024_v11 = vld [vmem:[#allocation5 + $0x80] ss:$8 sps:$4 sm:$0xff]  }
  0x2a   :  { %v1022_v10 = vld [vmem:[#allocation5 + $0x84] ss:$8 sps:$4 sm:$0xff]   ;;  %v1025_v12 = vld [vmem:[#allocation5 + $0x94] ss:$8 sps:$4 sm:$0xff]   ;;  %v1012_v13 = vld [vmem:[#allocation5 + $0x40] ss:$8 sps:$4 sm:$0xff]  }
  0x2b   :  { %456 = vmatprep.subr.bf16.mxu1 %v1022_v10  ;;  %v1027_v14 = vld [vmem:[#allocation5 + $0x90] ss:$8 sps:$4 sm:$0xff]   ;;  %v1028_v15 = vld [vmem:[#allocation5 + $0xa4] ss:$8 sps:$4 sm:$0xff]   ;;  %v1013_v16 = vld [vmem:[#allocation5 + $0x54] ss:$8 sps:$4 sm:$0xff]  }
  0x2c   :  { %246 = vmatpush1.bf16.msra.mxu0 %v1003_v4  ;;  %457 = vmatpush1.bf16.msra.mxu1 %v1024_v11  ;;  %v1015_v17 = vld [vmem:[#allocation5 + $0x50] ss:$8 sps:$4 sm:$0xff]   ;;  %v1030_v18 = vld [vmem:[#allocation5 + $0xa0] ss:$8 sps:$4 sm:$0xff]   ;;  %v1031_v19 = vld [vmem:[#allocation5 + $0xb4] ss:$8 sps:$4 sm:$0xff]  }
  0x2d   :  { %247 = vmatprep.subr.bf16.mxu0 %v1004_v5  ;;  %458 = vmatprep.subr.bf16.mxu1 %v1025_v12  ;;  %v1016_v20 = vld [vmem:[#allocation5 + $0x64] ss:$8 sps:$4 sm:$0xff]   ;;  %v1018_v21 = vld [vmem:[#allocation5 + $0x60] ss:$8 sps:$4 sm:$0xff]   ;;  %v1033_v22 = vld [vmem:[#allocation5 + $0xb0] ss:$8 sps:$4 sm:$0xff]  }
  0x2e   :  { %v1034_v23 = vld [vmem:[#allocation5 + $0xc4] ss:$8 sps:$4 sm:$0xff]   ;;  %v1019_v24 = vld [vmem:[#allocation5 + $0x74] ss:$8 sps:$4 sm:$0xff]   ;;  %v1021_v25 = vld [vmem:[#allocation5 + $0x70] ss:$8 sps:$4 sm:$0xff]  }
  0x2f   :  { %v1036_v26 = vld [vmem:[#allocation5 + $0xc0] ss:$8 sps:$4 sm:$0xff]   ;;  %v1037_v27 = vld [vmem:[#allocation5 + $0xd4] ss:$8 sps:$4 sm:$0xff]   ;;  %v1039_v29 = vld [vmem:[#allocation5 + $0xd0] ss:$8 sps:$4 sm:$0xff]  }
  0x30   :  { %248 = vmatpush1.bf16.msra.mxu0 %v1006_v6  ;;  %459 = vmatpush1.bf16.msra.mxu1 %v1027_v14  ;;  %v154_v28 = vld [vmem:[#allocation2] sm:$0xf]  ;;  %v1040_v30 = vld [vmem:[#allocation5 + $0xe4] ss:$8 sps:$4 sm:$0xff]   ;;  %v1042_v31 = vld [vmem:[#allocation5 + $0xe0] ss:$8 sps:$4 sm:$0xff]   ;;  %v155_v14 = vlaneseq }
  0x31   :  { %249 = vmatprep.subr.bf16.mxu0 %v1007_v7  ;;  %460 = vmatprep.subr.bf16.mxu1 %v1028_v15  ;;  %v1043_v32 = vld [vmem:[#allocation5 + $0xf4] ss:$8 sps:$4 sm:$0xff]   ;;  %v1045_v33 = vld [vmem:[#allocation5 + $0xf0] ss:$8 sps:$4 sm:$0xff]   ;;  %v1046_v34 = vld [vmem:[#allocation5 + $0x104] ss:$8 sps:$4 sm:$0xff]  }
  0x32   :  { %v1048_v35 = vld [vmem:[#allocation5 + $0x100] ss:$8 sps:$4 sm:$0xff]   ;;  %v1049_v36 = vld [vmem:[#allocation5 + $0x114] ss:$8 sps:$4 sm:$0xff]   ;;  %v1051_v37 = vld [vmem:[#allocation5 + $0x110] ss:$8 sps:$4 sm:$0xff]  }
  0x33   :  { %v1052_v38 = vld [vmem:[#allocation5 + $0x124] ss:$8 sps:$4 sm:$0xff]   ;;  %v1054_v39 = vld [vmem:[#allocation5 + $0x120] ss:$8 sps:$4 sm:$0xff]   ;;  %v1055_v40 = vld [vmem:[#allocation5 + $0x134] ss:$8 sps:$4 sm:$0xff]  }
  0x34   :  { %250 = vmatpush1.bf16.msra.mxu0 %v1009_v8  ;;  %461 = vmatpush1.bf16.msra.mxu1 %v1030_v18  ;;  %v1057_v41 = vld [vmem:[#allocation5 + $0x130] ss:$8 sps:$4 sm:$0xff]   ;;  %v1058_v42 = vld [vmem:[#allocation5 + $0x144] ss:$8 sps:$4 sm:$0xff]   ;;  %v1060_v43 = vld [vmem:[#allocation5 + $0x140] ss:$8 sps:$4 sm:$0xff]  }
  0x35   :  { %251 = vmatprep.subr.bf16.mxu0 %v1010_v9  ;;  %462 = vmatprep.subr.bf16.mxu1 %v1031_v19  ;;  %v1061_v44 = vld [vmem:[#allocation5 + $0x154] ss:$8 sps:$4 sm:$0xff]   ;;  %v1063_v45 = vld [vmem:[#allocation5 + $0x150] ss:$8 sps:$4 sm:$0xff]   ;;  %v1064_v46 = vld [vmem:[#allocation5 + $0x164] ss:$8 sps:$4 sm:$0xff]  }
  0x36   :  { %v1066_v47 = vld [vmem:[#allocation5 + $0x160] ss:$8 sps:$4 sm:$0xff]   ;;  %v1067_v48 = vld [vmem:[#allocation5 + $0x174] ss:$8 sps:$4 sm:$0xff]   ;;  %v1069_v49 = vld [vmem:[#allocation5 + $0x170] ss:$8 sps:$4 sm:$0xff]  }
  0x37   :  { %v1070_v50 = vld [vmem:[#allocation5 + $0x180] ss:$8 sps:$4 sm:$0xff]   ;;  %v1072_v51 = vld [vmem:[#allocation5 + $0x184] ss:$8 sps:$4 sm:$0xff]   ;;  %v1075_v52 = vld [vmem:[#allocation5 + $0x194] ss:$8 sps:$4 sm:$0xff]  }
  0x38   :  { %252 = vmatpush1.bf16.msra.mxu0 %v1012_v13  ;;  %463 = vmatpush1.bf16.msra.mxu1 %v1033_v22  ;;  %v1073_v53 = vld [vmem:[#allocation5 + $0x190] ss:$8 sps:$4 sm:$0xff]   ;;  %v1078_v54 = vld [vmem:[#allocation5 + $0x1a4] ss:$8 sps:$4 sm:$0xff]   ;;  %v1076_v55 = vld [vmem:[#allocation5 + $0x1a0] ss:$8 sps:$4 sm:$0xff]  }
  0x39   :  { %253 = vmatprep.subr.bf16.mxu0 %v1013_v16  ;;  %464 = vmatprep.subr.bf16.mxu1 %v1034_v23  ;;  %v1081_v56 = vld [vmem:[#allocation5 + $0x1b4] ss:$8 sps:$4 sm:$0xff]   ;;  %v1079_v57 = vld [vmem:[#allocation5 + $0x1b0] ss:$8 sps:$4 sm:$0xff]   ;;  %v1084_v58 = vld [vmem:[#allocation5 + $0x1c4] ss:$8 sps:$4 sm:$0xff]  }
  0x3a   :  { %v1082_v59 = vld [vmem:[#allocation5 + $0x1c0] ss:$8 sps:$4 sm:$0xff]   ;;  %v1087_v60 = vld [vmem:[#allocation5 + $0x1d4] ss:$8 sps:$4 sm:$0xff]   ;;  %v1085_v61 = vld [vmem:[#allocation5 + $0x1d0] ss:$8 sps:$4 sm:$0xff]  }
  0x3b   :  { %v1090_v62 = vld [vmem:[#allocation5 + $0x1e4] ss:$8 sps:$4 sm:$0xff]   ;;  %v1088_v63 = vld [vmem:[#allocation5 + $0x1e0] ss:$8 sps:$4 sm:$0xff]   ;;  %v1093_v0 = vld [vmem:[#allocation5 + $0x1f4] ss:$8 sps:$4 sm:$0xff]  }
  0x3c   :  { %254 = vmatpush1.bf16.msra.mxu0 %v1015_v17  ;;  %465 = vmatpush1.bf16.msra.mxu1 %v1036_v26  ;;  %v1091_v1 = vld [vmem:[#allocation5 + $0x1f0] ss:$8 sps:$4 sm:$0xff]   ;;  %v1096_v2 = vld [vmem:[#allocation5 + $0x204] ss:$8 sps:$4 sm:$0xff]   ;;  %v1094_v3 = vld [vmem:[#allocation5 + $0x200] ss:$8 sps:$4 sm:$0xff]  }
  0x3d   :  { %255 = vmatprep.subr.bf16.mxu0 %v1016_v20  ;;  %466 = vmatprep.subr.bf16.mxu1 %v1037_v27  ;;  %v1099_v4 = vld [vmem:[#allocation5 + $0x214] ss:$8 sps:$4 sm:$0xff]   ;;  %v1097_v5 = vld [vmem:[#allocation5 + $0x210] ss:$8 sps:$4 sm:$0xff]   ;;  %v1102_v6 = vld [vmem:[#allocation5 + $0x224] ss:$8 sps:$4 sm:$0xff]  }
  0x3e   :  { %v1100_v7 = vld [vmem:[#allocation5 + $0x220] ss:$8 sps:$4 sm:$0xff]   ;;  %v1105_v8 = vld [vmem:[#allocation5 + $0x234] ss:$8 sps:$4 sm:$0xff]   ;;  %v1103_v9 = vld [vmem:[#allocation5 + $0x230] ss:$8 sps:$4 sm:$0xff]  }
  0x3f   :  { %v1108_v10 = vld [vmem:[#allocation5 + $0x244] ss:$8 sps:$4 sm:$0xff]   ;;  %v1106_v11 = vld [vmem:[#allocation5 + $0x240] ss:$8 sps:$4 sm:$0xff]   ;;  %v1111_v12 = vld [vmem:[#allocation5 + $0x254] ss:$8 sps:$4 sm:$0xff]  }
  0x40   :  { %256 = vmatpush1.bf16.msra.mxu0 %v1018_v21  ;;  %467 = vmatpush1.bf16.msra.mxu1 %v1039_v29  ;;  %v1109_v13 = vld [vmem:[#allocation5 + $0x250] ss:$8 sps:$4 sm:$0xff]   ;;  %v1260_v15 = vshrl.u32 %v155_v14, 7  ;;  %v151_v16 = vld [vmem:[#allocation5 + $0x380] sm:$0x33]  ;;  %s864_s6 = sshll.u32 %s1213_s1, 4  ;;  %s865_s6 = int_to_ptr.vmem [resolvable:$true] %s864_s6 }
  0x41   :  { %257 = vmatprep.subr.bf16.mxu0 %v1019_v24  ;;  %468 = vmatprep.subr.bf16.mxu1 %v1040_v30  ;;  %v1262_v17 = vunpack.c.l.bf16 %v151_v16  ;;  %v1265_v19 = vunpack.c.h.bf16 %v151_v16  ;;  %s1180_s7 = scalar_lea.vmem %s865_s6, 64  ;;  %p1185_p3 = scmp.lt.s32.totalorder %s865_s6, %s865_s6 }
  0x42   :  { %v157_v18 = vsub.s32 0, %v1260_v15  ;;  %v716_v14 = vsub.s32 3, %v1260_v15  ;;  %p1181_p2 = scmp.ne.s32.totalorder %s865_s6, %s1180_s7  ;;  %p1186_p4 = scmp.lt.s32.totalorder %s1180_s7, %s1180_s7 }
  0x44   :  { %258 = vmatpush1.bf16.msra.mxu0 %v1021_v25  ;;  %469 = vmatpush1.bf16.msra.mxu1 %v1042_v31  ;;  %v158_v20 = vrot.slane %v1262_v17, %v157_v18  ;;  %v162_v21 = vrot.slane %v1265_v19, %v157_v18  ;;  %v717_v18 = vrot.slane %v1262_v17, %v716_v14  ;;  %p1187_p5 = por %p1186_p4, %p1185_p3 }
  0x45   :  { %470 = vmatprep.subr.bf16.mxu1 %v1043_v32  ;;  %669 = vmatprep.subr.bf16.mxu0 %v1072_v51  ;;  %v1114_v32 = vld [vmem:[#allocation5 + $0x264] ss:$8 sps:$4 sm:$0xff]  }
  0x46   :  { %p1188_p6 = pnand %p1187_p5, %p1181_p2 }
  0x47   :  { %276 = vmatmul.mubr.bf16.vlgmr.msra.gmra.mrb[0].mxu0 %v154_v28 }
  0x48   :  { %471 = vmatpush1.bf16.msra.mxu1 %v1045_v33  ;;  %670 = vmatpush1.bf16.msra.mxu0 %v1070_v50  ;;  %v1112_v33 = vld [vmem:[#allocation5 + $0x260] ss:$8 sps:$4 sm:$0xff]  }
  0x49   :  { %472 = vmatprep.subr.bf16.mxu1 %v1046_v34  ;;  %671 = vmatprep.subr.bf16.mxu0 %v1075_v52  ;;  %v1117_v34 = vld [vmem:[#allocation5 + $0x274] ss:$8 sps:$4 sm:$0xff]  }
  0x4c   :  { %473 = vmatpush1.bf16.msra.mxu1 %v1048_v35  ;;  %672 = vmatpush1.bf16.msra.mxu0 %v1073_v53  ;;  %v1115_v35 = vld [vmem:[#allocation5 + $0x270] ss:$8 sps:$4 sm:$0xff]  }
  0x4d   :  { %474 = vmatprep.subr.bf16.mxu1 %v1049_v36  ;;  %673 = vmatprep.subr.bf16.mxu0 %v1078_v54  ;;  %v1118_v36 = vld [vmem:[#allocation5 + $0x300] ss:$8 sps:$4 sm:$0xff]  }
  0x50   :  { %475 = vmatpush1.bf16.msra.mxu1 %v1051_v37  ;;  %674 = vmatpush1.bf16.msra.mxu0 %v1076_v55  ;;  %v1119_v37 = vld [vmem:[#allocation5 + $0x280] ss:$8 sps:$4 sm:$0xff]  }
  0x51   :  { %476 = vmatprep.subr.bf16.mxu1 %v1052_v38  ;;  %675 = vmatprep.subr.bf16.mxu0 %v1081_v56  ;;  %v1120_v38 = vld [vmem:[#allocation5 + $0x310] ss:$8 sps:$4 sm:$0xff]  }
  0x54   :  { %477 = vmatpush1.bf16.msra.mxu1 %v1054_v39  ;;  %676 = vmatpush1.bf16.msra.mxu0 %v1079_v57  ;;  %v1121_v39 = vld [vmem:[#allocation5 + $0x290] ss:$8 sps:$4 sm:$0xff]  }
  0x55   :  { %478 = vmatprep.subr.bf16.mxu1 %v1055_v40  ;;  %677 = vmatprep.subr.bf16.mxu0 %v1084_v58  ;;  %v1122_v40 = vld [vmem:[#allocation5 + $0x320] ss:$8 sps:$4 sm:$0xff]  }
  0x58   :  { %479 = vmatpush1.bf16.msra.mxu1 %v1057_v41  ;;  %678 = vmatpush1.bf16.msra.mxu0 %v1082_v59  ;;  %v1123_v41 = vld [vmem:[#allocation5 + $0x2a0] ss:$8 sps:$4 sm:$0xff]  }
  0x59   :  { %480 = vmatprep.subr.bf16.mxu1 %v1058_v42  ;;  %679 = vmatprep.subr.bf16.mxu0 %v1087_v60  ;;  %v1124_v42 = vld [vmem:[#allocation5 + $0x330] ss:$8 sps:$4 sm:$0xff]  }
  0x5c   :  { %481 = vmatpush1.bf16.msra.mxu1 %v1060_v43  ;;  %680 = vmatpush1.bf16.msra.mxu0 %v1085_v61  ;;  %v1125_v43 = vld [vmem:[#allocation5 + $0x2b0] ss:$8 sps:$4 sm:$0xff]   ;;  %v1130_v61 = vld [vmem:[#allocation5 + $0x360] ss:$8 sps:$4 sm:$0xff]  }
  0x5d   :  { %482 = vmatprep.subr.bf16.mxu1 %v1061_v44  ;;  %681 = vmatprep.subr.bf16.mxu0 %v1090_v62  ;;  %v1126_v44 = vld [vmem:[#allocation5 + $0x340] ss:$8 sps:$4 sm:$0xff]  }
  0x5e   :  { %v1131_v62 = vld [vmem:[#allocation5 + $0x2e0] ss:$8 sps:$4 sm:$0xff]  }
  0x60   :  { %483 = vmatpush1.bf16.msra.mxu1 %v1063_v45  ;;  %682 = vmatpush1.bf16.msra.mxu0 %v1088_v63  ;;  %v1127_v45 = vld [vmem:[#allocation5 + $0x2c0] ss:$8 sps:$4 sm:$0xff]   ;;  %v1132_v63 = vld [vmem:[#allocation5 + $0x370] ss:$8 sps:$4 sm:$0xff]  }
  0x61   :  { %484 = vmatprep.subr.bf16.mxu1 %v1064_v46  ;;  %683 = vmatprep.subr.bf16.mxu0 %v1093_v0  ;;  %v1128_v46 = vld [vmem:[#allocation5 + $0x350] ss:$8 sps:$4 sm:$0xff]  }
  0x62   :  { %v1133_v0 = vld [vmem:[#allocation5 + $0x2f0] ss:$8 sps:$4 sm:$0xff]  }
  0x64   :  { %485 = vmatpush1.bf16.msra.mxu1 %v1066_v47  ;;  %684 = vmatpush1.bf16.msra.mxu0 %v1091_v1  ;;  %v1129_v47 = vld [vmem:[#allocation5 + $0x2d0] ss:$8 sps:$4 sm:$0xff]   ;;  %v503_v1 = vsub.s32 2, %v1260_v15 }
  0x65   :  { %486 = vmatprep.subr.bf16.mxu1 %v1067_v48  ;;  %685 = vmatprep.subr.bf16.mxu0 %v1096_v2  ;;  %v290_v48 = vsub.s32 1, %v1260_v15 }
  0x66   :  { %v504_v2 = vrot.slane %v1262_v17, %v503_v1 }
  0x67   :  { %v295_v50 = vrot.slane %v1265_v19, %v290_v48 }
  0x68   :  { %487 = vmatpush1.bf16.msra.mxu1 %v1069_v49  ;;  %686 = vmatpush1.bf16.msra.mxu0 %v1094_v3  ;;  %v291_v49 = vrot.slane %v1262_v17, %v290_v48  ;;  %v508_v3 = vrot.slane %v1265_v19, %v503_v1 }
  0x69   :  { %687 = vmatprep.subr.bf16.mxu0 %v1099_v4  ;;  %970 = vmatprep.subr.bf16.mxu1 %v1118_v36 }
  0x6c   :  { %688 = vmatpush1.bf16.msra.mxu0 %v1097_v5 }
  0x6d   :  { %689 = vmatprep.subr.bf16.mxu0 %v1102_v6 }
  0x70   :  { %690 = vmatpush1.bf16.msra.mxu0 %v1100_v7 }
  0x71   :  { %691 = vmatprep.subr.bf16.mxu0 %v1105_v8 }
  0x74   :  { %692 = vmatpush1.bf16.msra.mxu0 %v1103_v9 }
  0x75   :  { %693 = vmatprep.subr.bf16.mxu0 %v1108_v10 }
  0x78   :  { %694 = vmatpush1.bf16.msra.mxu0 %v1106_v11 }
  0x79   :  { %695 = vmatprep.subr.bf16.mxu0 %v1111_v12 }
  0x7c   :  { %696 = vmatpush1.bf16.msra.mxu0 %v1109_v13 }
  0x7d   :  { %697 = vmatprep.subr.bf16.mxu0 %v1114_v32 }
  0x80   :  { %698 = vmatpush1.bf16.msra.mxu0 %v1112_v33 }
  0x81   :  { %699 = vmatprep.subr.bf16.mxu0 %v1117_v34 }
  0x84   :  { %700 = vmatpush1.bf16.msra.mxu0 %v1115_v35 }
 0x11a   :  { %v277_v22 = vpop.f32.mrb[0].mxu0 }
 0x11b   :  { %v278_v23 = vadd.f32 %v277_v22, %v158_v20  ;;  %v279_v24 = vpop.f32.mrb[1].mxu0 }
 0x11c   :  { %v280_v25 = vadd.f32 %v279_v24, %v162_v21  ;;  %v281_v26 = vpop.f32.mrb[2].mxu0 }
 0x11d   :  { %v284_v27 = vmax.f32 %v278_v23, 0.0  ;;  %v282_v28 = vpop.f32.mrb[3].mxu0 }
 0x11e   :  { %v285_v29 = vmax.f32 %v280_v25, 0.0 }
 0x11f   :  { %v286_v31 = vpack.c.bf16 %v284_v27, %v284_v27 }
 0x120   :  { %v287_v30 = vpack.c.bf16 %v285_v29, %v285_v29 }
 0x122   :  { %488 = vmatprep.mubr.bf16.mxu1 %v287_v30 }
 0x123   :  { %489 = vmatmul.mubr.bf16.vlgmr.msra.gmra.mrb[0].mxu1 %v286_v31 }
 0x124   :  { %971 = vmatpush3.bf16.msra.mxu1 %v1119_v37 }
 0x125   :  { %972 = vmatprep.subr.bf16.mxu1 %v1120_v38 }
 0x128   :  { %973 = vmatpush3.bf16.msra.mxu1 %v1121_v39 }
 0x129   :  { %974 = vmatprep.subr.bf16.mxu1 %v1122_v40 }
 0x12c   :  { %975 = vmatpush3.bf16.msra.mxu1 %v1123_v41 }
 0x12d   :  { %976 = vmatprep.subr.bf16.mxu1 %v1124_v42 }
 0x130   :  { %977 = vmatpush3.bf16.msra.mxu1 %v1125_v43 }
 0x131   :  { %978 = vmatprep.subr.bf16.mxu1 %v1126_v44 }
 0x134   :  { %979 = vmatpush3.bf16.msra.mxu1 %v1127_v45 }
 0x135   :  { %980 = vmatprep.subr.bf16.mxu1 %v1128_v46 }
 0x138   :  { %981 = vmatpush3.bf16.msra.mxu1 %v1129_v47 }
 0x139   :  { %982 = vmatprep.subr.bf16.mxu1 %v1130_v61 }
 0x13c   :  { %983 = vmatpush3.bf16.msra.mxu1 %v1131_v62 }
 0x13d   :  { %984 = vmatprep.subr.bf16.mxu1 %v1132_v63 }
 0x140   :  { %985 = vmatpush3.bf16.msra.mxu1 %v1133_v0 }
 0x1f6   :  { %v490_v51 = vpop.f32.mrb[0].mxu1 }
 0x1f7   :  { %v491_v52 = vadd.f32 %v490_v51, %v291_v49  ;;  %v492_v53 = vpop.f32.mrb[1].mxu1 }
 0x1f8   :  { %v493_v54 = vadd.f32 %v492_v53, %v295_v50  ;;  %v494_v55 = vpop.f32.mrb[2].mxu1 }
 0x1f9   :  { %v497_v56 = vmax.f32 %v491_v52, 0.0  ;;  %v495_v57 = vpop.f32.mrb[3].mxu1 }
 0x1fa   :  { %v498_v58 = vmax.f32 %v493_v54, 0.0 }
 0x1fb   :  { %v499_v60 = vpack.c.bf16 %v497_v56, %v497_v56 }
 0x1fc   :  { %v500_v59 = vpack.c.bf16 %v498_v58, %v498_v58 }
 0x1fe   :  { %701 = vmatprep.mubr.bf16.mxu0 %v500_v59 }
 0x1ff   :  { %702 = vmatmul.mubr.bf16.vlgmr.msra.gmra.mrb[4].mxu0 %v499_v60 }
 0x2d2   :  { %v703_v4 = vpop.f32.mrb[4].mxu0 }
 0x2d3   :  { %v704_v5 = vadd.f32 %v703_v4, %v504_v2  ;;  %v705_v6 = vpop.f32.mrb[5].mxu0 }
 0x2d4   :  { %v706_v7 = vadd.f32 %v705_v6, %v508_v3  ;;  %v707_v8 = vpop.f32.mrb[6].mxu0 }
 0x2d5   :  { %v710_v9 = vmax.f32 %v704_v5, 0.0  ;;  %v708_v10 = vpop.f32.mrb[7].mxu0 }
 0x2d6   :  { %v711_v11 = vmax.f32 %v706_v7, 0.0 }
 0x2d7   :  { %v712_v13 = vpack.c.bf16 %v710_v9, %v710_v9 }
 0x2d8   :  { %v713_v12 = vpack.c.bf16 %v711_v11, %v711_v11 }
 0x2da   :  { %846 = vmatprep.mubr.bf16.mxu1 %v713_v12 }
 0x2db   :  { %847 = vmatmul.mubr.bf16.vlgmr.msra.gmra.mrb[4].mxu1 %v712_v13 }
 0x3ae   :  { %v986_v16 = vpop.f32.mrb[4].mxu1 }
 0x3af   :  { %v987_v20 = vpop.f32.mrb[5].mxu1 }
 0x3b0   :  { %v988_v21 = vadd.f32 %v987_v20, %v986_v16  ;;  %v989_v19 = vpop.f32.mrb[6].mxu1 }
 0x3b1   :  { %v990_v22 = vpop.f32.mrb[7].mxu1 }
 0x3b2   :  { %v849_v23 = vadd.f32 %v988_v21, %v717_v18 }
 0x3b4   :  { %1134 = vtanh.f32 %v849_v23 }
 0x3be   :  { %v1135_v24 = vpop.eup %1134 }
 0x3bf   :  { %v855_v25 = vmul.f32 2.0, %v1135_v24 }
 0x3c1   :  { %v856_v26 = vpack.c.bf16 %v855_v25, %v855_v25 }
 0x3c3   :  { %857 = vst [vmem:[#allocation7] sm:$0xf] %v856_v26 }
 0x3c4   :  { %1191 = shalt.err (!%p1188_p6)
}
 0x3c5   :  { %s1192_s10 = scalar_lea.hbm %s1291_s2, 64 }
 0x3c6   :  { %p1193_p7 = scmp.ne.s32.totalorder %s1291_s2, %s1192_s10  ;;  %p1196_p8 = scmp.lt.u32.totalorder %s1192_s10, %s1291_s2 }
 0x3c8   :  { %p1198_p9 = pnand %p1196_p8, %p1193_p7 }
 0x3ca   :  { %1201 = shalt.err (!%p1198_p9)
}
 0x3cb   :  { %867 = dma.vmem_to_hbm [thread:$0]  %s865_s6, 64, %s1291_s2, [#allocation4]  }
 0x3cc   :  { %1206 = dma.done.wait [#allocation4], 64  }
 0x3cd   :  { %1207 = vsyncadd [#allocation4], 4294967232 }
 0x3ce   :  { %871 = vsyncpa [#allocation3], 1 }
 0x3cf   :  { %872 = vsyncpa [#allocation6], 1 }
 0x3d0   :  { %873 = vsyncpa [#allocation4], 1 }

</bundles_post_ra>
